<compile_context>
chip_gen: v6e
topology: v6e:2x2x1
jax: 0.10.0
libtpu: 0.0.40
codegen_flags: <defaults>
</compile_context>

<pallas_src>
import functools

import jax
import jax.numpy as jnp
import numpy as np
from jax import lax
from jax.experimental import pallas as pl
from jax.experimental.pallas import tpu as pltpu


def _triplet_kernel(xr_ref, xc_ref, sqr_ref, tc_ref, tr_ref, loss_ref, prec_ref,
                    *, n, margin):
    xr = xr_ref[...]                     # (TM, D) block rows
    xc = xc_ref[...]                     # (N, D)  all rows (Gram columns)
    sq_row = sqr_ref[...]                # (1, N)  ||x_j||^2 (precomputed from x)
    t_col = tc_ref[...]                  # (TM, 1) int32 targets of the block rows
    t_row = tr_ref[...]                  # (1, N)  int32 targets of all rows

    # Gram block on the MXU; squared norms straight from x (no diag extraction).
    # TODO(synk): optionally cast xr/xc to bf16 here (2x MXU on v6e/v7x) — kept f32 so the
    # near-tie order statistics and the integer `prec` count match the reference exactly.
    gram = lax.dot_general(xr, xc, (((1,), (1,)), ((), ())),
                           preferred_element_type=jnp.float32)          # (TM, N)
    sq_col = jnp.sum(xr * xr, axis=1, keepdims=True)                    # (TM, 1)
    dist2 = jnp.maximum(sq_col + sq_row - 2.0 * gram, 1e-12)            # clamp as in ref

    pos = t_col == t_row                                                # (TM, N) same-class

    tm = xr.shape[0]
    ci = lax.broadcasted_iota(jnp.int32, (tm, n), 1)

    # Orderable, row-unique keys: dist2 > 0 so its f32 bit pattern is monotone under signed
    # int32 compare; clear the low log2(next_pow2(N)) mantissa bits and pack the lane index
    # there.  Uniqueness lets us remove exactly one extremum per step with a single
    # cross-lane reduction (no first-occurrence index reduction).
    low = pl.next_power_of_2(n) - 1
    keys = (pltpu.bitcast(dist2, jnp.int32) & jnp.int32(~low)) | ci

    int_min = jnp.int32(-(2 ** 31))
    int_max = jnp.int32(2 ** 31 - 1)

    # dist_ap[i] = 3rd-largest distance among same-class columns (self included).
    kap = jnp.where(pos, keys, int_min)
    for _ in range(2):                   # each step removes exactly one row-max
        kap = jnp.where(kap == jnp.max(kap, axis=1, keepdims=True), int_min, kap)
    sel = kap == jnp.max(kap, axis=1, keepdims=True)
    d2_ap = jnp.max(jnp.where(sel, dist2, 0.0), axis=1, keepdims=True)  # exact value recovery

    # dist_an[i] = 6th-smallest distance among different-class columns.
    kan = jnp.where(pos, int_max, keys)
    for _ in range(5):
        kan = jnp.where(kan == jnp.min(kan, axis=1, keepdims=True), int_max, kan)
    sel = kan == jnp.min(kan, axis=1, keepdims=True)
    d2_an = jnp.max(jnp.where(sel, dist2, 0.0), axis=1, keepdims=True)

    dist_ap = jnp.sqrt(d2_ap)            # sqrt only on the (TM, 1) selected values
    dist_an = jnp.sqrt(d2_an)

    # MarginRankingLoss(dist_an, dist_ap, y=1): per-row max(0, dist_ap - dist_an + margin).
    per_row = jnp.maximum(dist_ap - dist_an + margin, 0.0)
    loss_ref[...] = jnp.sum(per_row, axis=0, keepdims=True)             # (1,1) partial sum
    prec_ref[...] = jnp.sum((dist_an > dist_ap).astype(jnp.int32),
                            axis=0, keepdims=True)                      # (1,1) partial count


def _pick_block_rows(n):
    """Largest sublane-aligned row tile that divides n and keeps (TM,N) temps ~<=16 MiB."""
    if n % 8 != 0:
        return n
    budget_rows = max(8, (16 * 1024 * 1024) // (64 * max(n, 1)))
    for cand in (512, 256, 128, 64, 32, 16, 8):
        if n % cand == 0 and cand <= budget_rows:
            return cand
    return n


def triplet_loss(inputs, targets, margin=0.0):
    """Returns (loss, prec) matching TripletLoss.forward semantics."""
    x = inputs.astype(jnp.float32)
    n, d = x.shape

    tm = _pick_block_rows(n)
    if n % tm != 0:
        tm = n
    grid = n // tm

    t = targets.astype(jnp.int32)
    t_col = t.reshape(n, 1)
    t_row = t.reshape(1, n)
    sq_row = jnp.sum(x * x, axis=1).reshape(1, n)     # column norms, straight from x

    kernel = functools.partial(_triplet_kernel, n=n, margin=float(margin))

    # Rough live-buffer estimate for the chosen tile; clamp to a safe scoped-VMEM range.
    vmem_est = 4 * (2 * n * d + 2 * tm * d + 16 * tm * n) + (1 << 20)
    vmem_limit = int(min(max(vmem_est, 32 * 1024 * 1024), 64 * 1024 * 1024))

    loss_p, prec_p = pl.pallas_call(
        kernel,
        out_shape=(jax.ShapeDtypeStruct((grid, 1), jnp.float32),
                   jax.ShapeDtypeStruct((grid, 1), jnp.int32)),
        grid_spec=pltpu.PrefetchScalarGridSpec(
            num_scalar_prefetch=0,
            grid=(grid,),
            in_specs=[
                pl.BlockSpec((tm, d), lambda i: (i, 0)),   # row block of x
                pl.BlockSpec((n, d), lambda i: (0, 0)),    # all of x (Gram columns)
                pl.BlockSpec((1, n), lambda i: (0, 0)),    # ||x_j||^2 row vector
                pl.BlockSpec((tm, 1), lambda i: (i, 0)),   # targets of block rows
                pl.BlockSpec((1, n), lambda i: (0, 0)),    # targets of all rows
            ],
            out_specs=(pl.BlockSpec((1, 1), lambda i: (i, 0)),
                       pl.BlockSpec((1, 1), lambda i: (i, 0))),
        ),
        compiler_params=pltpu.CompilerParams(
            dimension_semantics=("parallel",),
            vmem_limit_bytes=vmem_limit),
    )(x, x, sq_row, t_col, t_row)

    loss = jnp.sum(loss_p) / n            # MarginRankingLoss reduction='mean'
    prec = jnp.sum(prec_p)
    return loss, prec


if __name__ == "__main__":
    key = jax.random.PRNGKey(0)
    n, d = 16, 32
    inputs = jax.random.normal(key, (n, d), dtype=jnp.float32)
    # 4 classes x 4 samples each: every row has 4 positives (>=3) and 12 negatives (>=6),
    # as required by the sorted(...)[-3] / sorted(...)[5] selections in the reference.
    targets = jnp.repeat(jnp.arange(4, dtype=jnp.int32), 4)

    loss, prec = triplet_loss(inputs, targets, margin=0.0)
    jax.block_until_ready((loss, prec))

    # Plain numpy reference (mirrors the PyTorch forward exactly).
    xi = np.asarray(inputs, dtype=np.float64)
    t = np.asarray(targets)
    sq = (xi ** 2).sum(1)
    d2 = sq[:, None] + sq[None, :] - 2.0 * xi @ xi.T
    dref = np.sqrt(np.clip(d2, 1e-12, None))
    mask = t[:, None] == t[None, :]
    ap = np.array([sorted(dref[i][mask[i]])[-3] for i in range(n)])
    an = np.array([sorted(dref[i][~mask[i]])[5] for i in range(n)])
    ref_loss = float(np.mean(np.maximum(ap - an + 0.0, 0.0)))
    ref_prec = int((an > ap).sum())

    assert abs(float(loss) - ref_loss) < 1e-2, (float(loss), ref_loss)
    assert int(prec) == ref_prec, (int(prec), ref_prec)
    print("KERNEL_OK")
</pallas_src>

<mosaic_0001>
module attributes {stable_mosaic.version = 11 : i64} {
  func.func @_triplet_kernel(%arg0: i32, %arg1: memref<16x32xf32, #tpu.memory_space<vmem>>, %arg2: memref<16x32xf32, #tpu.memory_space<vmem>>, %arg3: memref<1x16xf32, #tpu.memory_space<vmem>>, %arg4: memref<16x1xi32, #tpu.memory_space<vmem>>, %arg5: memref<1x16xi32, #tpu.memory_space<vmem>>, %arg6: memref<1x1xf32, #tpu.memory_space<vmem>>, %arg7: memref<1x1xi32, #tpu.memory_space<vmem>>) attributes {dimension_semantics = [#tpu.dimension_semantics<parallel>], iteration_bounds = array<i64: 1>, scalar_prefetch = 0 : i64, scratch_operands = 0 : i64, tpu.core_type = #tpu.core_type<tc>, window_params = [{transform_indices = @transform_0, window_bounds = array<i64: 16, 32>}, {pipeline_mode = #tpu.pipeline_mode<synchronous>, transform_indices = @transform_1, window_bounds = array<i64: 16, 32>}, {pipeline_mode = #tpu.pipeline_mode<synchronous>, transform_indices = @transform_2, window_bounds = array<i64: 1, 16>}, {transform_indices = @transform_3, window_bounds = array<i64: 16, 1>}, {pipeline_mode = #tpu.pipeline_mode<synchronous>, transform_indices = @transform_4, window_bounds = array<i64: 1, 16>}, {transform_indices = @transform_5, window_bounds = array<i64: 1, 1>}, {transform_indices = @transform_6, window_bounds = array<i64: 1, 1>}]} {
    %c0 = arith.constant 0 : index
    %c0_0 = arith.constant 0 : index
    %0 = vector.load %arg1[%c0, %c0_0] : memref<16x32xf32, #tpu.memory_space<vmem>>, vector<16x32xf32>
    %c0_1 = arith.constant 0 : index
    %c0_2 = arith.constant 0 : index
    %1 = vector.load %arg2[%c0_1, %c0_2] : memref<16x32xf32, #tpu.memory_space<vmem>>, vector<16x32xf32>
    %c0_3 = arith.constant 0 : index
    %c0_4 = arith.constant 0 : index
    %2 = vector.load %arg3[%c0_3, %c0_4] : memref<1x16xf32, #tpu.memory_space<vmem>>, vector<1x16xf32>
    %c0_5 = arith.constant 0 : index
    %c0_6 = arith.constant 0 : index
    %3 = vector.load %arg4[%c0_5, %c0_6] : memref<16x1xi32, #tpu.memory_space<vmem>>, vector<16x1xi32>
    %c0_7 = arith.constant 0 : index
    %c0_8 = arith.constant 0 : index
    %4 = vector.load %arg5[%c0_7, %c0_8] : memref<1x16xi32, #tpu.memory_space<vmem>>, vector<1x16xi32>
    %cst = arith.constant dense<0.000000e+00> : vector<16x16xf32>
    %5 = tpu.matmul %0, %1, %cst {dimension_numbers = #tpu.dot_dimension_numbers<[1], [1], [0], [0], [0, 0, 1, 0], [], []>} : vector<16x32xf32>, vector<16x32xf32>, vector<16x16xf32> -> vector<16x16xf32>
    %6 = arith.mulf %0, %0 : vector<16x32xf32>
    %cst_9 = arith.constant dense<0.000000e+00> : vector<16xf32>
    %7 = vector.multi_reduction <add>, %6, %cst_9 [1] : vector<16x32xf32> to vector<16xf32>
    %8 = vector.shape_cast %7 : vector<16xf32> to vector<16x1xf32>
    %9 = vector.broadcast %8 : vector<16x1xf32> to vector<16x16xf32>
    %10 = vector.broadcast %2 : vector<1x16xf32> to vector<16x16xf32>
    %11 = arith.addf %9, %10 : vector<16x16xf32>
    %cst_10 = arith.constant 2.000000e+00 : f32
    %12 = vector.broadcast %cst_10 : f32 to vector<16x16xf32>
    %13 = arith.mulf %12, %5 : vector<16x16xf32>
    %14 = arith.subf %11, %13 : vector<16x16xf32>
    %cst_11 = arith.constant 9.99999996E-13 : f32
    %15 = vector.broadcast %cst_11 : f32 to vector<16x16xf32>
    %16 = arith.maximumf %14, %15 : vector<16x16xf32>
    %17 = vector.broadcast %3 : vector<16x1xi32> to vector<16x16xi32>
    %18 = vector.broadcast %4 : vector<1x16xi32> to vector<16x16xi32>
    %19 = arith.cmpi eq, %17, %18 : vector<16x16xi32>
    %20 = tpu.iota {dimensions = array<i32: 1>} : vector<16x16xi32>
    %21 = tpu.bitcast %16 : vector<16x16xf32> -> vector<16x16xi32>
    %c-16_i32 = arith.constant -16 : i32
    %22 = vector.broadcast %c-16_i32 : i32 to vector<16x16xi32>
    %23 = arith.andi %21, %22 : vector<16x16xi32>
    %24 = arith.ori %23, %20 : vector<16x16xi32>
    %c-2147483648_i32 = arith.constant -2147483648 : i32
    %25 = vector.broadcast %c-2147483648_i32 : i32 to vector<16x16xi32>
    %26 = arith.select %19, %24, %25 : vector<16x16xi1>, vector<16x16xi32>
    %cst_12 = arith.constant dense<-2147483648> : vector<16xi32>
    %27 = vector.multi_reduction <maxsi>, %26, %cst_12 [1] : vector<16x16xi32> to vector<16xi32>
    %28 = vector.shape_cast %27 : vector<16xi32> to vector<16x1xi32>
    %29 = vector.broadcast %28 : vector<16x1xi32> to vector<16x16xi32>
    %30 = arith.cmpi eq, %26, %29 : vector<16x16xi32>
    %c-2147483648_i32_13 = arith.constant -2147483648 : i32
    %31 = vector.broadcast %c-2147483648_i32_13 : i32 to vector<16x16xi32>
    %32 = arith.select %30, %31, %26 : vector<16x16xi1>, vector<16x16xi32>
    %cst_14 = arith.constant dense<-2147483648> : vector<16xi32>
    %33 = vector.multi_reduction <maxsi>, %32, %cst_14 [1] : vector<16x16xi32> to vector<16xi32>
    %34 = vector.shape_cast %33 : vector<16xi32> to vector<16x1xi32>
    %35 = vector.broadcast %34 : vector<16x1xi32> to vector<16x16xi32>
    %36 = arith.cmpi eq, %32, %35 : vector<16x16xi32>
    %c-2147483648_i32_15 = arith.constant -2147483648 : i32
    %37 = vector.broadcast %c-2147483648_i32_15 : i32 to vector<16x16xi32>
    %38 = arith.select %36, %37, %32 : vector<16x16xi1>, vector<16x16xi32>
    %cst_16 = arith.constant dense<-2147483648> : vector<16xi32>
    %39 = vector.multi_reduction <maxsi>, %38, %cst_16 [1] : vector<16x16xi32> to vector<16xi32>
    %40 = vector.shape_cast %39 : vector<16xi32> to vector<16x1xi32>
    %41 = vector.broadcast %40 : vector<16x1xi32> to vector<16x16xi32>
    %42 = arith.cmpi eq, %38, %41 : vector<16x16xi32>
    %cst_17 = arith.constant 0.000000e+00 : f32
    %43 = vector.broadcast %cst_17 : f32 to vector<16x16xf32>
    %44 = arith.select %42, %16, %43 : vector<16x16xi1>, vector<16x16xf32>
    %cst_18 = arith.constant dense<0xFF800000> : vector<16xf32>
    %45 = vector.multi_reduction <maximumf>, %44, %cst_18 [1] : vector<16x16xf32> to vector<16xf32>
    %46 = vector.shape_cast %45 : vector<16xf32> to vector<16x1xf32>
    %c2147483647_i32 = arith.constant 2147483647 : i32
    %47 = vector.broadcast %c2147483647_i32 : i32 to vector<16x16xi32>
    %48 = arith.select %19, %47, %24 : vector<16x16xi1>, vector<16x16xi32>
    %cst_19 = arith.constant dense<2147483647> : vector<16xi32>
    %49 = vector.multi_reduction <minsi>, %48, %cst_19 [1] : vector<16x16xi32> to vector<16xi32>
    %50 = vector.shape_cast %49 : vector<16xi32> to vector<16x1xi32>
    %51 = vector.broadcast %50 : vector<16x1xi32> to vector<16x16xi32>
    %52 = arith.cmpi eq, %48, %51 : vector<16x16xi32>
    %c2147483647_i32_20 = arith.constant 2147483647 : i32
    %53 = vector.broadcast %c2147483647_i32_20 : i32 to vector<16x16xi32>
    %54 = arith.select %52, %53, %48 : vector<16x16xi1>, vector<16x16xi32>
    %cst_21 = arith.constant dense<2147483647> : vector<16xi32>
    %55 = vector.multi_reduction <minsi>, %54, %cst_21 [1] : vector<16x16xi32> to vector<16xi32>
    %56 = vector.shape_cast %55 : vector<16xi32> to vector<16x1xi32>
    %57 = vector.broadcast %56 : vector<16x1xi32> to vector<16x16xi32>
    %58 = arith.cmpi eq, %54, %57 : vector<16x16xi32>
    %c2147483647_i32_22 = arith.constant 2147483647 : i32
    %59 = vector.broadcast %c2147483647_i32_22 : i32 to vector<16x16xi32>
    %60 = arith.select %58, %59, %54 : vector<16x16xi1>, vector<16x16xi32>
    %cst_23 = arith.constant dense<2147483647> : vector<16xi32>
    %61 = vector.multi_reduction <minsi>, %60, %cst_23 [1] : vector<16x16xi32> to vector<16xi32>
    %62 = vector.shape_cast %61 : vector<16xi32> to vector<16x1xi32>
    %63 = vector.broadcast %62 : vector<16x1xi32> to vector<16x16xi32>
    %64 = arith.cmpi eq, %60, %63 : vector<16x16xi32>
    %c2147483647_i32_24 = arith.constant 2147483647 : i32
    %65 = vector.broadcast %c2147483647_i32_24 : i32 to vector<16x16xi32>
    %66 = arith.select %64, %65, %60 : vector<16x16xi1>, vector<16x16xi32>
    %cst_25 = arith.constant dense<2147483647> : vector<16xi32>
    %67 = vector.multi_reduction <minsi>, %66, %cst_25 [1] : vector<16x16xi32> to vector<16xi32>
    %68 = vector.shape_cast %67 : vector<16xi32> to vector<16x1xi32>
    %69 = vector.broadcast %68 : vector<16x1xi32> to vector<16x16xi32>
    %70 = arith.cmpi eq, %66, %69 : vector<16x16xi32>
    %c2147483647_i32_26 = arith.constant 2147483647 : i32
    %71 = vector.broadcast %c2147483647_i32_26 : i32 to vector<16x16xi32>
    %72 = arith.select %70, %71, %66 : vector<16x16xi1>, vector<16x16xi32>
    %cst_27 = arith.constant dense<2147483647> : vector<16xi32>
    %73 = vector.multi_reduction <minsi>, %72, %cst_27 [1] : vector<16x16xi32> to vector<16xi32>
    %74 = vector.shape_cast %73 : vector<16xi32> to vector<16x1xi32>
    %75 = vector.broadcast %74 : vector<16x1xi32> to vector<16x16xi32>
    %76 = arith.cmpi eq, %72, %75 : vector<16x16xi32>
    %c2147483647_i32_28 = arith.constant 2147483647 : i32
    %77 = vector.broadcast %c2147483647_i32_28 : i32 to vector<16x16xi32>
    %78 = arith.select %76, %77, %72 : vector<16x16xi1>, vector<16x16xi32>
    %cst_29 = arith.constant dense<2147483647> : vector<16xi32>
    %79 = vector.multi_reduction <minsi>, %78, %cst_29 [1] : vector<16x16xi32> to vector<16xi32>
    %80 = vector.shape_cast %79 : vector<16xi32> to vector<16x1xi32>
    %81 = vector.broadcast %80 : vector<16x1xi32> to vector<16x16xi32>
    %82 = arith.cmpi eq, %78, %81 : vector<16x16xi32>
    %cst_30 = arith.constant 0.000000e+00 : f32
    %83 = vector.broadcast %cst_30 : f32 to vector<16x16xf32>
    %84 = arith.select %82, %16, %83 : vector<16x16xi1>, vector<16x16xf32>
    %cst_31 = arith.constant dense<0xFF800000> : vector<16xf32>
    %85 = vector.multi_reduction <maximumf>, %84, %cst_31 [1] : vector<16x16xf32> to vector<16xf32>
    %86 = vector.shape_cast %85 : vector<16xf32> to vector<16x1xf32>
    %87 = math.sqrt %46 : vector<16x1xf32>
    %88 = math.sqrt %86 : vector<16x1xf32>
    %89 = arith.subf %87, %88 : vector<16x1xf32>
    %cst_32 = arith.constant 0.000000e+00 : f32
    %90 = vector.broadcast %cst_32 : f32 to vector<16x1xf32>
    %91 = arith.addf %89, %90 : vector<16x1xf32>
    %cst_33 = arith.constant 0.000000e+00 : f32
    %92 = vector.broadcast %cst_33 : f32 to vector<16x1xf32>
    %93 = arith.maximumf %91, %92 : vector<16x1xf32>
    %cst_34 = arith.constant dense<0.000000e+00> : vector<1xf32>
    %94 = vector.multi_reduction <add>, %93, %cst_34 [0] : vector<16x1xf32> to vector<1xf32>
    %95 = vector.shape_cast %94 : vector<1xf32> to vector<1x1xf32>
    %c0_35 = arith.constant 0 : index
    %c0_36 = arith.constant 0 : index
    %96 = vector.load %arg6[%c0_35, %c0_36] : memref<1x1xf32, #tpu.memory_space<vmem>>, vector<1x1xf32>
    tpu.vector_store %arg6[%c0_35, %c0_36], %95 {strides = array<i32>} : memref<1x1xf32, #tpu.memory_space<vmem>>, vector<1x1xf32>,
    %97 = arith.cmpf ogt, %88, %87 : vector<16x1xf32>
    %98 = arith.extui %97 : vector<16x1xi1> to vector<16x1xi32>
    %cst_37 = arith.constant dense<0> : vector<1xi32>
    %99 = vector.multi_reduction <add>, %98, %cst_37 [0] : vector<16x1xi32> to vector<1xi32>
    %100 = vector.shape_cast %99 : vector<1xi32> to vector<1x1xi32>
    %c0_38 = arith.constant 0 : index
    %c0_39 = arith.constant 0 : index
    %101 = vector.load %arg7[%c0_38, %c0_39] : memref<1x1xi32, #tpu.memory_space<vmem>>, vector<1x1xi32>
    tpu.vector_store %arg7[%c0_38, %c0_39], %100 {strides = array<i32>} : memref<1x1xi32, #tpu.memory_space<vmem>>, vector<1x1xi32>,
    return
  }
  func.func @transform_0(%arg0: i32) -> (i32, i32) {
    %c0_i32 = arith.constant 0 : i32
    %c0_i32_0 = arith.constant 0 : i32
    return %arg0, %c0_i32 : i32, i32
  }
  func.func @transform_1(%arg0: i32) -> (i32, i32) {
    %c0_i32 = arith.constant 0 : i32
    %c0_i32_0 = arith.constant 0 : i32
    %c0_i32_1 = arith.constant 0 : i32
    return %c0_i32, %c0_i32_0 : i32, i32
  }
  func.func @transform_2(%arg0: i32) -> (i32, i32) {
    %c0_i32 = arith.constant 0 : i32
    %c0_i32_0 = arith.constant 0 : i32
    %c0_i32_1 = arith.constant 0 : i32
    return %c0_i32, %c0_i32_0 : i32, i32
  }
  func.func @transform_3(%arg0: i32) -> (i32, i32) {
    %c0_i32 = arith.constant 0 : i32
    %c0_i32_0 = arith.constant 0 : i32
    return %arg0, %c0_i32 : i32, i32
  }
  func.func @transform_4(%arg0: i32) -> (i32, i32) {
    %c0_i32 = arith.constant 0 : i32
    %c0_i32_0 = arith.constant 0 : i32
    %c0_i32_1 = arith.constant 0 : i32
    return %c0_i32, %c0_i32_0 : i32, i32
  }
  func.func @transform_5(%arg0: i32) -> (i32, i32) {
    %c0_i32 = arith.constant 0 : i32
    %c0_i32_0 = arith.constant 0 : i32
    return %arg0, %c0_i32 : i32, i32
  }
  func.func @transform_6(%arg0: i32) -> (i32, i32) {
    %c0_i32 = arith.constant 0 : i32
    %c0_i32_0 = arith.constant 0 : i32
    return %arg0, %c0_i32 : i32, i32
  }
}

</mosaic_0001>

<bundles_post_ra>
// kernel: tpu_custom_call.1
= control target key start
LH: loop header
LB: loop body
LE: loop exit
PB: predicated region body
PF: predicated region fallthrough
CT: control target
= control target key end

     0   :  { %12 = vsyncpa [#allocation3], 0  ;;  %s852_s0 = inlined_call_operand.vmem [shape: f32[16,32], index: 0, kind: input, shape index: {}]   ;;  %s853_s1 = inlined_call_operand.hbm [shape: f32[16,32], index: 1, kind: input, shape index: {}]   ;;  %s854_s2 = inlined_call_operand.vmem [shape: f32[1,16], index: 2, kind: input, shape index: {}]   ;;  %s855_s3 = inlined_call_operand.vmem [shape: s32[16,1], index: 3, kind: input, shape index: {}]   ;;  %s856_s4 = inlined_call_operand.vmem [shape: s32[1,16], index: 4, kind: input, shape index: {}]   ;;  %s857_s5 = inlined_call_operand.hbm [shape: f32[1,1], index: 5, kind: output, shape index: {0}]   ;;  %s858_s6 = inlined_call_operand.hbm [shape: s32[1,1], index: 6, kind: output, shape index: {1}]  }
   0x1   :  { %13 = vsyncpa [#allocation4], 0 }
   0x2   :  { %14 = vsyncpa [#allocation7], 0  ;;  %s682_s21 = smov [#allocation2]  }
   0x3   :  { %s22_s22 = sshll.u32 %s682_s21, 4  ;;  %s23_s22 = int_to_ptr.vmem [resolvable:$true] %s22_s22 }
   0x4   :  { %s624_s23 = scalar_lea.vmem %s23_s22, 256  ;;  %p629_p1 = scmp.lt.s32.totalorder %s23_s22, %s23_s22 }
   0x5   :  { %p625_p0 = scmp.ne.s32.totalorder %s23_s22, %s624_s23  ;;  %p630_p2 = scmp.lt.s32.totalorder %s624_s23, %s624_s23 }
   0x7   :  { %p631_p3 = por %p630_p2, %p629_p1 }
   0x9   :  { %p632_p4 = pnand %p631_p3, %p625_p0 }
   0xb   :  { %635 = shalt.err (!%p632_p4)
}
   0xc   :  { %s683_s24 = smov 128   ;;  %s684_s25 = smov 8  }
   0xd   :  { %28 = dma.hbm_to_vmem [thread:$0]  %s853_s1, 256, %s23_s22, [#allocation3], %s683_s24, %s683_s24, %s684_s25  }
   0xe   :  { %676 = dma.done.wait [#allocation3], 256  }
   0xf   :  { %677 = vsyncadd [#allocation3], 4294967040  ;;  %v685_v0 = vmov 0   ;;  %vm46_vm0 = vcmask 261120   ;;  %v41_v1 = vld [vmem:[#allocation2 + $0x8] sm:$0xff]  ;;  %v40_v2 = vld [vmem:[#allocation2] sm:$0xff]  ;;  %v168_v19 = vlaneseq }
  0x10   :  { %606 = vset.pattern.permute.xlu1 %v685_v0  ;;  %607 = vset.pattern.permute.xlu0 %v685_v0  ;;  %v38_v3 = vld [vmem:[%s852_s0] sm:$0xff]  ;;  %v39_v5 = vld [vmem:[%s852_s0 + $0x8] sm:$0xff]  ;;  %vm178_vm2 = vcmask 130048   ;;  %s687_s13 = smov [#allocation5]  }
  0x11   :  { %593 = vmatprep.subr.msk.mxu0 %vm46_vm0, %v41_v1  ;;  %597 = vmatprep.mubr.msk.f32.mxu0 %vm46_vm0, %v38_v3  ;;  %v134_v4 = vmul.f32 %v38_v3, %v38_v3  ;;  %v43_v6 = vld [vmem:[%s855_s3] sm:$0xff]  ;;  %v135_v7 = vmul.f32 %v39_v5, %v39_v5  ;;  %v44_v9 = vld [vmem:[%s855_s3 + $0x8] sm:$0xff]  ;;  %v169_v26 = vand.u32 127, %v168_v19  ;;  %s560_s14 = sshll.u32 %s687_s13, 4  ;;  %s561_s14 = int_to_ptr.vmem [resolvable:$true] %s560_s14 }
  0x12   :  { %594 = vmatpush3.xpose.msk.msra.mxu0 %vm46_vm0, %v41_v1  ;;  %157 = vperm.xlu1 %606, %v43_v6   ;;  %v587_v12 = vld [vmem:[%s854_s2] ss:$0 sm:$0xff]  ;;  %s686_s2 = smov [#allocation6]  }
  0x13   :  { %595 = vmatprep.subr.msk.mxu0 %vm46_vm0, %v40_v2  ;;  %v136_v8 = vsel %vm46_vm0, %v134_v4, 0.0  ;;  %v139_v10 = vsel %vm46_vm0, %v135_v7, 0.0  ;;  %v588_v25 = vld [vmem:[%s856_s4] ss:$0 sm:$0xff]  ;;  %s570_s4 = sshll.u32 %s686_s2, 4  ;;  %s571_s4 = int_to_ptr.vmem [resolvable:$true] %s570_s4 }
  0x14   :  { %137 = vadd.xlane.f32.xlu0 %v136_v8  ;;  %s636_s15 = scalar_lea.vmem %s571_s4, 16  ;;  %s640_s16 = scalar_lea.vmem %s571_s4, 32 }
  0x15   :  { %p637_p5 = scmp.ne.s32.totalorder %s571_s4, %s636_s15  ;;  %p641_p6 = scmp.lt.s32.totalorder %s571_s4, %s571_s4 }
  0x16   :  { %596 = vmatpush3.xpose.msk.msra.mxu0 %vm46_vm0, %v40_v2  ;;  %160 = vperm.xlu1 %606, %v44_v9   ;;  %p642_p7 = scmp.lt.s32.totalorder %s640_s16, %s636_s15 }
  0x18   :  { %140 = vadd.xlane.f32.xlu0 %v139_v10  ;;  %p643_p8 = por %p642_p7, %p641_p6 }
  0x19   :  { %598 = vmatmul.mubr.msk.f32.vlgmr.msra.gmra.mxu0 %vm46_vm0, %v39_v5 }
  0x1a   :  { %p644_p9 = pnand %p643_p8, %p637_p5 }
  0x8d   :  { %v158_v15 = vpop.permute.xlu1 %157 }
  0x8e   :  { %vm166_vm3 = vcmp.eq.s32.totalorder %v158_v15, %v588_v25 }
  0x91   :  { %v161_v27 = vpop.permute.xlu1 %160 }
  0x92   :  { %vm167_vm1 = vcmp.eq.s32.totalorder %v161_v27, %v588_v25 }
  0x9d   :  { %v138_v11 = vpop.xlane.xlu0 %137 }
  0x9e   :  { %v148_v17 = vadd.f32 %v587_v12, %v138_v11 }
  0xa1   :  { %v141_v13 = vpop.xlane.xlu0 %140 }
  0xa2   :  { %v149_v14 = vadd.f32 %v587_v12, %v141_v13 }
  0xd9   :  { %v599_v16 = vpop.f32.mrf.mxu0 }
  0xda   :  { %v151_v18 = vmul.f32 2.0, %v599_v16 }
  0xdb   :  { %v125_v20 = vpop.f32.mrf.mxu0 }
  0xdc   :  { %v153_v21 = vsub.f32 %v149_v14, %v151_v18  ;;  %v150_v22 = vmul.f32 2.0, %v125_v20 }
  0xde   :  { %v751_v23 = vmax.f32 %v153_v21, 1e-12  ;;  %v152_v24 = vsub.f32 %v148_v17, %v150_v22 }
  0xe0   :  { %v756_v28 = vmax.f32 %v152_v24, 1e-12  ;;  %v173_v29 = vand.u32 4294967280, %v751_v23 }
  0xe2   :  { %v172_v30 = vand.u32 4294967280, %v756_v28  ;;  %v175_v31 = vor.u32 %v173_v29, %v169_v26 }
  0xe4   :  { %v174_v32 = vor.u32 %v172_v30, %v169_v26  ;;  %v760_v33 = vsel %vm167_vm1, %v175_v31, 2147483648  ;;  %v288_v34 = vsel %vm167_vm1, 2147483647, %v175_v31 }
  0xe5   :  { %v304_v35 = vsel %vm178_vm2, %v288_v34, 2147483647 }
  0xe6   :  { %v763_v36 = vsel %vm166_vm3, %v174_v32, 2147483648  ;;  %v287_v37 = vsel %vm166_vm3, 2147483647, %v174_v32  ;;  %v306_v38 = vshra.s32 %v304_v35, 16  ;;  %v305_v47 = vand.u32 65535, %v304_v35 }
  0xe7   :  { %v289_v39 = vsel %vm178_vm2, %v287_v37, 2147483647 }
  0xe8   :  { %v308_v40 = vcvt.s32.f32 %v306_v38  ;;  %v291_v41 = vshra.s32 %v289_v39, 16  ;;  %v290_v43 = vand.u32 65535, %v289_v39  ;;  %v307_v49 = vcvt.s32.f32 %v305_v47 }
  0xea   :  { %309 = vmin.xlane.f32.xlu1 %v308_v40  ;;  %v293_v42 = vcvt.s32.f32 %v291_v41  ;;  %v292_v46 = vcvt.s32.f32 %v290_v43  ;;  %v194_v43 = vsel %vm178_vm2, %v760_v33, 2147483648 }
  0xeb   :  { %v196_v47 = vshra.s32 %v194_v43, 16 }
  0xec   :  { %294 = vmin.xlane.f32.xlu0 %v293_v42 }
 0x173   :  { %v310_v44 = vpop.xlane.xlu1 %309 }
 0x174   :  { %vm311_vm5 = vcmp.eq.f32.partialorder %v308_v40, %v310_v44  ;;  %v316_v53 = vcvt.f32.s32 %v310_v44 }
 0x175   :  { %v295_v45 = vpop.xlane.xlu0 %294  ;;  %v312_v50 = vsel %vm311_vm5, %v307_v49, inf  ;;  %v198_v49 = vcvt.s32.f32 %v196_v47 }
 0x176   :  { %vm296_vm4 = vcmp.eq.f32.partialorder %v293_v42, %v295_v45  ;;  %v301_v51 = vcvt.f32.s32 %v295_v45  ;;  %v317_v58 = vshll.u32 %v316_v53, 16 }
 0x177   :  { %v297_v48 = vsel %vm296_vm4, %v292_v46, inf }
 0x178   :  { %298 = vmin.xlane.f32.xlu0 %v297_v48  ;;  %v302_v54 = vshll.u32 %v301_v51, 16 }
 0x17c   :  { %313 = vmin.xlane.f32.xlu0 %v312_v50 }
 0x201   :  { %v299_v52 = vpop.xlane.xlu0 %298 }
 0x202   :  { %v300_v55 = vcvt.f32.s32 %v299_v52 }
 0x204   :  { %v303_v56 = vadd.s32 %v302_v54, %v300_v55 }
 0x205   :  { %v314_v57 = vpop.xlane.xlu0 %313 }
 0x206   :  { %vm319_vm6 = vcmp.eq.s32.totalorder %v287_v37, %v303_v56  ;;  %v315_v59 = vcvt.f32.s32 %v314_v57 }
 0x207   :  { %v321_v60 = vsel %vm319_vm6, 2147483647, %v287_v37  ;;  %v179_v37 = vsel %vm178_vm2, %v763_v36, 2147483648 }
 0x208   :  { %v318_v61 = vadd.s32 %v317_v58, %v315_v59  ;;  %v323_v62 = vsel %vm178_vm2, %v321_v60, 2147483647  ;;  %v181_v41 = vshra.s32 %v179_v37, 16 }
 0x209   :  { %v325_v63 = vshra.s32 %v323_v62, 16  ;;  %v324_v6 = vand.u32 65535, %v323_v62 }
 0x20a   :  { %vm320_vm7 = vcmp.eq.s32.totalorder %v288_v34, %v318_v61  ;;  %v183_v46 = vcvt.s32.f32 %v181_v41 }
 0x20b   :  { %v327_v1 = vcvt.s32.f32 %v325_v63  ;;  %v322_v2 = vsel %vm320_vm7, 2147483647, %v288_v34  ;;  %v326_v8 = vcvt.s32.f32 %v324_v6 }
 0x20c   :  { %v338_v3 = vsel %vm178_vm2, %v322_v2, 2147483647 }
 0x20d   :  { %328 = vmin.xlane.f32.xlu0 %v327_v1  ;;  %v340_v4 = vshra.s32 %v338_v3, 16  ;;  %v339_v9 = vand.u32 65535, %v338_v3 }
 0x20f   :  { %v342_v5 = vcvt.s32.f32 %v340_v4  ;;  %v341_v12 = vcvt.s32.f32 %v339_v9 }
 0x211   :  { %343 = vmin.xlane.f32.xlu0 %v342_v5 }
 0x296   :  { %v329_v7 = vpop.xlane.xlu0 %328 }
 0x297   :  { %vm330_vm8 = vcmp.eq.f32.partialorder %v327_v1, %v329_v7  ;;  %v335_v14 = vcvt.f32.s32 %v329_v7  ;;  %v180_v1 = vand.u32 65535, %v179_v37 }
 0x298   :  { %v331_v10 = vsel %vm330_vm8, %v326_v8, inf  ;;  %v195_v8 = vand.u32 65535, %v194_v43 }
 0x299   :  { %332 = vmin.xlane.f32.xlu0 %v331_v10  ;;  %v336_v16 = vshll.u32 %v335_v14, 16  ;;  %v182_v7 = vcvt.s32.f32 %v180_v1 }
 0x29a   :  { %v344_v11 = vpop.xlane.xlu0 %343 }
 0x29b   :  { %vm345_vm9 = vcmp.eq.f32.partialorder %v342_v5, %v344_v11  ;;  %v350_v17 = vcvt.f32.s32 %v344_v11  ;;  %v197_v11 = vcvt.s32.f32 %v195_v8 }
 0x29c   :  { %v346_v13 = vsel %vm345_vm9, %v341_v12, inf }
 0x29d   :  { %347 = vmin.xlane.f32.xlu0 %v346_v13  ;;  %v351_v21 = vshll.u32 %v350_v17, 16 }
 0x322   :  { %v333_v15 = vpop.xlane.xlu0 %332 }
 0x323   :  { %v334_v18 = vcvt.f32.s32 %v333_v15 }
 0x325   :  { %v337_v19 = vadd.s32 %v336_v16, %v334_v18 }
 0x326   :  { %v348_v20 = vpop.xlane.xlu0 %347 }
 0x327   :  { %vm353_vm10 = vcmp.eq.s32.totalorder %v321_v60, %v337_v19  ;;  %v349_v22 = vcvt.f32.s32 %v348_v20 }
 0x328   :  { %v355_v24 = vsel %vm353_vm10, 2147483647, %v321_v60 }
 0x329   :  { %v352_v25 = vadd.s32 %v351_v21, %v349_v22  ;;  %v357_v26 = vsel %vm178_vm2, %v355_v24, 2147483647 }
 0x32a   :  { %v359_v27 = vshra.s32 %v357_v26, 16  ;;  %v358_v35 = vand.u32 65535, %v357_v26 }
 0x32b   :  { %vm354_vm11 = vcmp.eq.s32.totalorder %v322_v2, %v352_v25 }
 0x32c   :  { %v361_v29 = vcvt.s32.f32 %v359_v27  ;;  %v356_v30 = vsel %vm354_vm11, 2147483647, %v322_v2  ;;  %v360_v39 = vcvt.s32.f32 %v358_v35 }
 0x32d   :  { %v372_v31 = vsel %vm178_vm2, %v356_v30, 2147483647 }
 0x32e   :  { %362 = vmin.xlane.f32.xlu0 %v361_v29  ;;  %v374_v32 = vshra.s32 %v372_v31, 16  ;;  %v373_v40 = vand.u32 65535, %v372_v31 }
 0x330   :  { %v376_v34 = vcvt.s32.f32 %v374_v32  ;;  %v375_v45 = vcvt.s32.f32 %v373_v40 }
 0x332   :  { %377 = vmin.xlane.f32.xlu0 %v376_v34 }
 0x3b7   :  { %v363_v38 = vpop.xlane.xlu0 %362 }
 0x3b8   :  { %vm364_vm12 = vcmp.eq.f32.partialorder %v361_v29, %v363_v38  ;;  %v369_v50 = vcvt.f32.s32 %v363_v38 }
 0x3b9   :  { %v365_v42 = vsel %vm364_vm12, %v360_v39, inf }
 0x3ba   :  { %366 = vmin.xlane.f32.xlu0 %v365_v42  ;;  %v370_v52 = vshll.u32 %v369_v50, 16 }
 0x3bb   :  { %v378_v44 = vpop.xlane.xlu0 %377 }
 0x3bc   :  { %vm379_vm13 = vcmp.eq.f32.partialorder %v376_v34, %v378_v44  ;;  %v384_v53 = vcvt.f32.s32 %v378_v44 }
 0x3bd   :  { %v380_v48 = vsel %vm379_vm13, %v375_v45, inf }
 0x3be   :  { %381 = vmin.xlane.f32.xlu1 %v380_v48  ;;  %184 = vmax.xlane.f32.xlu0 %v183_v46  ;;  %v385_v57 = vshll.u32 %v384_v53, 16 }
 0x3c2   :  { %199 = vmax.xlane.f32.xlu1 %v198_v49 }
 0x443   :  { %v367_v51 = vpop.xlane.xlu0 %366 }
 0x444   :  { %v368_v54 = vcvt.f32.s32 %v367_v51 }
 0x446   :  { %v371_v55 = vadd.s32 %v370_v52, %v368_v54 }
 0x447   :  { %v382_v56 = vpop.xlane.xlu1 %381  ;;  %v185_v63 = vpop.xlane.xlu0 %184 }
 0x448   :  { %vm387_vm14 = vcmp.eq.s32.totalorder %v355_v24, %v371_v55  ;;  %v383_v58 = vcvt.f32.s32 %v382_v56  ;;  %vm186_vm0 = vcmp.eq.f32.partialorder %v183_v46, %v185_v63  ;;  %v191_v17 = vcvt.f32.s32 %v185_v63 }
 0x449   :  { %v774_v59 = vsel %vm387_vm14, 2147483647, %v355_v24  ;;  %v187_v10 = vsel %vm186_vm0, %v182_v7, -inf }
 0x44a   :  { %v386_v60 = vadd.s32 %v385_v57, %v383_v58  ;;  %v391_v61 = vsel %vm178_vm2, %v774_v59, 2147483647  ;;  %v192_v22 = vshll.u32 %v191_v17, 16 }
 0x44b   :  { %v393_v62 = vshra.s32 %v391_v61, 16  ;;  %v200_v6 = vpop.xlane.xlu1 %199  ;;  %v392_v13 = vand.u32 65535, %v391_v61 }
 0x44c   :  { %vm388_vm15 = vcmp.eq.s32.totalorder %v356_v30, %v386_v60  ;;  %vm201_vm1 = vcmp.eq.f32.partialorder %v198_v49, %v200_v6  ;;  %v206_v24 = vcvt.f32.s32 %v200_v6 }
 0x44d   :  { %v395_v2 = vcvt.s32.f32 %v393_v62  ;;  %v778_v3 = vsel %vm388_vm15, 2147483647, %v356_v30  ;;  %v202_v12 = vsel %vm201_vm1, %v197_v11, -inf  ;;  %v394_v15 = vcvt.s32.f32 %v392_v13 }
 0x44e   :  { %v406_v4 = vsel %vm178_vm2, %v778_v3, 2147483647  ;;  %v207_v30 = vshll.u32 %v206_v24, 16 }
 0x44f   :  { %396 = vmin.xlane.f32.xlu0 %v395_v2  ;;  %v408_v5 = vshra.s32 %v406_v4, 16  ;;  %v407_v16 = vand.u32 65535, %v406_v4 }
 0x451   :  { %v410_v9 = vcvt.s32.f32 %v408_v5  ;;  %v409_v21 = vcvt.s32.f32 %v407_v16 }
 0x453   :  { %411 = vmin.xlane.f32.xlu1 %v410_v9  ;;  %188 = vmax.xlane.f32.xlu0 %v187_v10 }
 0x457   :  { %203 = vmax.xlane.f32.xlu1 %v202_v12 }
 0x4d8   :  { %v397_v14 = vpop.xlane.xlu0 %396 }
 0x4d9   :  { %vm398_vm3 = vcmp.eq.f32.partialorder %v395_v2, %v397_v14 }
 0x4da   :  { %v399_v18 = vsel %vm398_vm3, %v394_v15, inf }
 0x4db   :  { %400 = vmin.xlane.f32.xlu0 %v399_v18 }
 0x4dc   :  { %v412_v19 = vpop.xlane.xlu1 %411  ;;  %v189_v20 = vpop.xlane.xlu0 %188 }
 0x4dd   :  { %v190_v25 = vcvt.f32.s32 %v189_v20  ;;  %vm413_vm4 = vcmp.eq.f32.partialorder %v410_v9, %v412_v19  ;;  %v418_v45 = vcvt.f32.s32 %v412_v19 }
 0x4de   :  { %v414_v26 = vsel %vm413_vm4, %v409_v21, inf }
 0x4df   :  { %v193_v27 = vadd.s32 %v192_v22, %v190_v25  ;;  %415 = vmin.xlane.f32.xlu1 %v414_v26  ;;  %v419_v49 = vshll.u32 %v418_v45, 16 }
 0x4e0   :  { %v204_v29 = vpop.xlane.xlu1 %203 }
 0x4e1   :  { %vm209_vm5 = vcmp.eq.s32.totalorder %v763_v36, %v193_v27  ;;  %v205_v31 = vcvt.f32.s32 %v204_v29 }
 0x4e2   :  { %v784_v32 = vsel %vm209_vm5, 2147483648, %v763_v36  ;;  %v403_v36 = vcvt.f32.s32 %v397_v14 }
 0x4e3   :  { %v208_v34 = vadd.s32 %v207_v30, %v205_v31  ;;  %v213_v35 = vsel %vm178_vm2, %v784_v32, 2147483648 }
 0x4e4   :  { %v215_v37 = vshra.s32 %v213_v35, 16  ;;  %v404_v44 = vshll.u32 %v403_v36, 16  ;;  %v214_v54 = vand.u32 65535, %v213_v35 }
 0x4e5   :  { %vm210_vm6 = vcmp.eq.s32.totalorder %v760_v33, %v208_v34 }
 0x4e6   :  { %v217_v38 = vcvt.s32.f32 %v215_v37  ;;  %v790_v39 = vsel %vm210_vm6, 2147483648, %v760_v33 }
 0x4e7   :  { %v228_v40 = vsel %vm178_vm2, %v790_v39, 2147483648 }
 0x4e8   :  { %218 = vmax.xlane.f32.xlu0 %v217_v38  ;;  %v230_v41 = vshra.s32 %v228_v40, 16  ;;  %v229_v61 = vand.u32 65535, %v228_v40 }
 0x4ea   :  { %v232_v42 = vcvt.s32.f32 %v230_v41  ;;  %v231_v2 = vcvt.s32.f32 %v229_v61 }
 0x4ec   :  { %233 = vmax.xlane.f32.xlu1 %v232_v42 }
 0x564   :  { %v401_v43 = vpop.xlane.xlu0 %400 }
 0x565   :  { %v402_v46 = vcvt.f32.s32 %v401_v43 }
 0x567   :  { %v405_v47 = vadd.s32 %v404_v44, %v402_v46 }
 0x568   :  { %v416_v48 = vpop.xlane.xlu1 %415 }
 0x569   :  { %vm421_vm7 = vcmp.eq.s32.totalorder %v774_v59, %v405_v47  ;;  %v417_v50 = vcvt.f32.s32 %v416_v48 }
 0x56a   :  { %v796_v33 = vsel %vm421_vm7, 2147483647, %v774_v59  ;;  %v216_v59 = vcvt.s32.f32 %v214_v54 }
 0x56b   :  { %v420_v51 = vadd.s32 %v419_v49, %v417_v50  ;;  %v425_v52 = vsel %vm178_vm2, %v796_v33, 2147483647 }
 0x56c   :  { %v427_v53 = vshra.s32 %v425_v52, 16 }
 0x56d   :  { %vm422_vm8 = vcmp.eq.s32.totalorder %v778_v3, %v420_v51 }
 0x56e   :  { %v429_v55 = vcvt.s32.f32 %v427_v53  ;;  %v802_v56 = vsel %vm422_vm8, 2147483647, %v778_v3  ;;  %v426_v3 = vand.u32 65535, %v425_v52 }
 0x56f   :  { %v440_v57 = vsel %vm178_vm2, %v802_v56, 2147483647 }
 0x570   :  { %430 = vmin.xlane.f32.xlu0 %v429_v55  ;;  %v442_v58 = vshra.s32 %v440_v57, 16  ;;  %v428_v6 = vcvt.s32.f32 %v426_v3  ;;  %v441_v7 = vand.u32 65535, %v440_v57 }
 0x571   :  { %v219_v60 = vpop.xlane.xlu0 %218 }
 0x572   :  { %v444_v62 = vcvt.s32.f32 %v442_v58  ;;  %vm220_vm9 = vcmp.eq.f32.partialorder %v217_v38, %v219_v60  ;;  %v225_v8 = vcvt.f32.s32 %v219_v60  ;;  %v443_v12 = vcvt.s32.f32 %v441_v7 }
 0x573   :  { %v221_v63 = vsel %vm220_vm9, %v216_v59, -inf }
 0x574   :  { %445 = vmin.xlane.f32.xlu1 %v444_v62  ;;  %222 = vmax.xlane.f32.xlu0 %v221_v63  ;;  %v226_v13 = vshll.u32 %v225_v8, 16 }
 0x575   :  { %v234_v1 = vpop.xlane.xlu1 %233 }
 0x576   :  { %vm235_vm10 = vcmp.eq.f32.partialorder %v232_v42, %v234_v1  ;;  %v240_v14 = vcvt.f32.s32 %v234_v1 }
 0x577   :  { %v236_v4 = vsel %vm235_vm10, %v231_v2, -inf }
 0x578   :  { %237 = vmax.xlane.f32.xlu1 %v236_v4  ;;  %v241_v19 = vshll.u32 %v240_v14, 16 }
 0x5f9   :  { %v431_v5 = vpop.xlane.xlu0 %430 }
 0x5fa   :  { %vm432_vm11 = vcmp.eq.f32.partialorder %v429_v55, %v431_v5 }
 0x5fb   :  { %v433_v9 = vsel %vm432_vm11, %v428_v6, inf }
 0x5fc   :  { %434 = vmin.xlane.f32.xlu0 %v433_v9 }
 0x5fd   :  { %v446_v10 = vpop.xlane.xlu1 %445  ;;  %v223_v11 = vpop.xlane.xlu0 %222 }
 0x5fe   :  { %v224_v15 = vcvt.f32.s32 %v223_v11  ;;  %vm447_vm12 = vcmp.eq.f32.partialorder %v444_v62, %v446_v10  ;;  %v452_v37 = vcvt.f32.s32 %v446_v10 }
 0x5ff   :  { %v448_v16 = vsel %vm447_vm12, %v443_v12, inf }
 0x600   :  { %v227_v17 = vadd.s32 %v226_v13, %v224_v15  ;;  %449 = vmin.xlane.f32.xlu1 %v448_v16  ;;  %v453_v42 = vshll.u32 %v452_v37, 16 }
 0x601   :  { %v238_v18 = vpop.xlane.xlu1 %237 }
 0x602   :  { %vm243_vm13 = vcmp.eq.s32.totalorder %v784_v32, %v227_v17  ;;  %v239_v20 = vcvt.f32.s32 %v238_v18 }
 0x603   :  { %v808_v21 = vsel %vm243_vm13, 2147483648, %v784_v32  ;;  %v437_v32 = vcvt.f32.s32 %v431_v5 }
 0x604   :  { %v242_v22 = vadd.s32 %v241_v19, %v239_v20  ;;  %v247_v24 = vsel %vm178_vm2, %v808_v21, 2147483648 }
 0x605   :  { %v249_v25 = vshra.s32 %v247_v24, 16  ;;  %v438_v35 = vshll.u32 %v437_v32, 16  ;;  %v248_v46 = vand.u32 65535, %v247_v24 }
 0x606   :  { %vm244_vm14 = vcmp.eq.s32.totalorder %v790_v39, %v242_v22 }
 0x607   :  { %v251_v26 = vcvt.s32.f32 %v249_v25  ;;  %v814_v27 = vsel %vm244_vm14, 2147483648, %v790_v39 }
 0x608   :  { %v262_v29 = vsel %vm178_vm2, %v814_v27, 2147483648 }
 0x609   :  { %252 = vmax.xlane.f32.xlu0 %v251_v26  ;;  %v264_v30 = vshra.s32 %v262_v29, 16  ;;  %v263_v52 = vand.u32 65535, %v262_v29 }
 0x60b   :  { %v266_v31 = vcvt.s32.f32 %v264_v30  ;;  %v265_v57 = vcvt.s32.f32 %v263_v52 }
 0x60d   :  { %267 = vmax.xlane.f32.xlu1 %v266_v31 }
 0x685   :  { %v435_v34 = vpop.xlane.xlu0 %434 }
 0x686   :  { %v436_v38 = vcvt.f32.s32 %v435_v34 }
 0x688   :  { %v439_v40 = vadd.s32 %v438_v35, %v436_v38 }
 0x689   :  { %v450_v41 = vpop.xlane.xlu1 %449 }
 0x68a   :  { %vm455_vm15 = vcmp.eq.s32.totalorder %v796_v33, %v439_v40  ;;  %v451_v36 = vcvt.f32.s32 %v450_v41 }
 0x68b   :  { %v820_v39 = vsel %vm455_vm15, 2147483647, %v796_v33  ;;  %v250_v33 = vcvt.s32.f32 %v248_v46 }
 0x68c   :  { %v454_v43 = vadd.s32 %v453_v42, %v451_v36  ;;  %v459_v44 = vsel %vm178_vm2, %v820_v39, 2147483647 }
 0x68d   :  { %v461_v45 = vshra.s32 %v459_v44, 16 }
 0x68e   :  { %vm456_vm0 = vcmp.eq.s32.totalorder %v802_v56, %v454_v43 }
 0x68f   :  { %v463_v47 = vcvt.s32.f32 %v461_v45  ;;  %v826_v48 = vsel %vm456_vm0, 2147483647, %v802_v56  ;;  %v460_v56 = vand.u32 65535, %v459_v44 }
 0x690   :  { %v474_v49 = vsel %vm178_vm2, %v826_v48, 2147483647 }
 0x691   :  { %464 = vmin.xlane.f32.xlu0 %v463_v47  ;;  %v476_v50 = vshra.s32 %v474_v49, 16  ;;  %v462_v59 = vcvt.s32.f32 %v460_v56  ;;  %v475_v61 = vand.u32 65535, %v474_v49 }
 0x692   :  { %v253_v51 = vpop.xlane.xlu0 %252 }
 0x693   :  { %v478_v53 = vcvt.s32.f32 %v476_v50  ;;  %vm254_vm1 = vcmp.eq.f32.partialorder %v251_v26, %v253_v51  ;;  %v259_v62 = vcvt.f32.s32 %v253_v51  ;;  %v477_v4 = vcvt.s32.f32 %v475_v61 }
 0x694   :  { %v255_v54 = vsel %vm254_vm1, %v250_v33, -inf }
 0x695   :  { %479 = vmin.xlane.f32.xlu1 %v478_v53  ;;  %256 = vmax.xlane.f32.xlu0 %v255_v54  ;;  %v260_v3 = vshll.u32 %v259_v62, 16 }
 0x696   :  { %v268_v55 = vpop.xlane.xlu1 %267 }
 0x697   :  { %vm269_vm3 = vcmp.eq.f32.partialorder %v266_v31, %v268_v55  ;;  %v274_v5 = vcvt.f32.s32 %v268_v55 }
 0x698   :  { %v270_v58 = vsel %vm269_vm3, %v265_v57, -inf }
 0x699   :  { %271 = vmax.xlane.f32.xlu1 %v270_v58  ;;  %v275_v10 = vshll.u32 %v274_v5, 16 }
 0x71a   :  { %v465_v60 = vpop.xlane.xlu0 %464 }
 0x71b   :  { %vm466_vm4 = vcmp.eq.f32.partialorder %v463_v47, %v465_v60  ;;  %v471_v17 = vcvt.f32.s32 %v465_v60 }
 0x71c   :  { %v467_v63 = vsel %vm466_vm4, %v462_v59, inf  ;;  %vm540_vm4 = vcmask 0  }
 0x71d   :  { %468 = vmin.xlane.f32.xlu0 %v467_v63  ;;  %v472_v19 = vshll.u32 %v471_v17, 16 }
 0x71e   :  { %v480_v1 = vpop.xlane.xlu1 %479  ;;  %v257_v2 = vpop.xlane.xlu0 %256 }
 0x71f   :  { %v258_v6 = vcvt.f32.s32 %v257_v2  ;;  %vm481_vm5 = vcmp.eq.f32.partialorder %v478_v53, %v480_v1  ;;  %v486_v20 = vcvt.f32.s32 %v480_v1 }
 0x720   :  { %v482_v7 = vsel %vm481_vm5, %v477_v4, inf }
 0x721   :  { %v261_v8 = vadd.s32 %v260_v3, %v258_v6  ;;  %483 = vmin.xlane.f32.xlu1 %v482_v7  ;;  %v487_v25 = vshll.u32 %v486_v20, 16 }
 0x722   :  { %v272_v9 = vpop.xlane.xlu1 %271 }
 0x723   :  { %v273_v11 = vcvt.f32.s32 %v272_v9  ;;  %vm277_vm6 = vcmp.eq.s32.totalorder %v808_v21, %v261_v8 }
 0x724   :  { %v279_v12 = vsel %vm277_vm6, %v756_v28, 0.0 }
 0x725   :  { %v276_v13 = vadd.s32 %v275_v10, %v273_v11  ;;  %v281_v14 = vsel %vm178_vm2, %v279_v12, -inf }
 0x726   :  { %282 = vmax.xlane.f32.xlu0 %v281_v14 }
 0x727   :  { %vm278_vm7 = vcmp.eq.s32.totalorder %v814_v27, %v276_v13 }
 0x728   :  { %v280_v15 = vsel %vm278_vm7, %v751_v23, 0.0 }
 0x729   :  { %v284_v16 = vsel %vm178_vm2, %v280_v15, -inf }
 0x72a   :  { %285 = vmax.xlane.f32.xlu1 %v284_v16 }
 0x7a6   :  { %v469_v18 = vpop.xlane.xlu0 %468 }
 0x7a7   :  { %v470_v22 = vcvt.f32.s32 %v469_v18 }
 0x7a9   :  { %v473_v24 = vadd.s32 %v472_v19, %v470_v22 }
 0x7aa   :  { %v484_v21 = vpop.xlane.xlu1 %483 }
 0x7ab   :  { %v485_v26 = vcvt.f32.s32 %v484_v21  ;;  %vm489_vm8 = vcmp.eq.s32.totalorder %v820_v39, %v473_v24 }
 0x7ac   :  { %v491_v29 = vsel %vm489_vm8, %v756_v28, 0.0 }
 0x7ad   :  { %v488_v30 = vadd.s32 %v487_v25, %v485_v26  ;;  %v493_v27 = vsel %vm178_vm2, %v491_v29, -inf }
 0x7ae   :  { %494 = vmax.xlane.f32.xlu0 %v493_v27 }
 0x7af   :  { %vm490_vm9 = vcmp.eq.s32.totalorder %v826_v48, %v488_v30  ;;  %v283_v34 = vpop.xlane.xlu0 %282 }
 0x7b0   :  { %v492_v31 = vsel %vm490_vm9, %v751_v23, 0.0  ;;  %608 = vrsqrt.f32 %v283_v34  ;;  %vm501_vm11 = vcmp.eq.f32.partialorder %v283_v34, inf  ;;  %v504_v46 = vand.u32 2147483648, %v283_v34 }
 0x7b1   :  { %v496_v32 = vsel %vm178_vm2, %v492_v31, -inf  ;;  %vm503_vm13 = vcmp.eq.f32.partialorder %v283_v34, 0.0 }
 0x7b2   :  { %497 = vmax.xlane.f32.xlu1 %v496_v32 }
 0x7b3   :  { %v286_v35 = vpop.xlane.xlu1 %285 }
 0x7b4   :  { %610 = vrsqrt.f32 %v286_v35  ;;  %vm508_vm12 = vcmp.eq.f32.partialorder %v286_v35, inf  ;;  %vm510_vm14 = vcmp.eq.f32.partialorder %v286_v35, 0.0  ;;  %v511_v50 = vand.u32 2147483648, %v286_v35 }
 0x7bd   :  { %v609_v28 = vpop.eup %608 }
 0x7be   :  { %v500_v42 = vmul.f32 %v609_v28, %v283_v34 }
 0x7c0   :  { %v502_v44 = vsel %vm501_vm11, %v283_v34, %v500_v42 }
 0x7c1   :  { %v611_v40 = vpop.eup %610  ;;  %v505_v51 = vsel %vm503_vm13, %v504_v46, %v502_v44 }
 0x7c2   :  { %v507_v39 = vmul.f32 %v611_v40, %v286_v35 }
 0x7c4   :  { %v509_v48 = vsel %vm508_vm12, %v286_v35, %v507_v39 }
 0x7c5   :  { %v512_v54 = vsel %vm510_vm14, %v511_v50, %v509_v48 }
 0x837   :  { %v495_v37 = vpop.xlane.xlu0 %494 }
 0x838   :  { %612 = vrsqrt.f32 %v495_v37  ;;  %vm515_vm10 = vcmp.eq.f32.partialorder %v495_v37, inf  ;;  %v518_v43 = vand.u32 2147483648, %v495_v37  ;;  %vm517_vm2 = vcmp.eq.f32.partialorder %v495_v37, 0.0 }
 0x83b   :  { %v498_v38 = vpop.xlane.xlu1 %497 }
 0x83c   :  { %614 = vrsqrt.f32 %v498_v38  ;;  %vm522_vm15 = vcmp.eq.f32.partialorder %v498_v38, inf  ;;  %v525_v33 = vand.u32 2147483648, %v498_v38  ;;  %vm524_vm1 = vcmp.eq.f32.partialorder %v498_v38, 0.0 }
 0x845   :  { %v613_v41 = vpop.eup %612 }
 0x846   :  { %v514_v36 = vmul.f32 %v613_v41, %v495_v37 }
 0x848   :  { %v516_v23 = vsel %vm515_vm10, %v495_v37, %v514_v36 }
 0x849   :  { %v615_v45 = vpop.eup %614  ;;  %v519_v47 = vsel %vm517_vm2, %v518_v43, %v516_v23 }
 0x84a   :  { %v521_v49 = vmul.f32 %v615_v45, %v498_v38  ;;  %v527_v52 = vsub.f32 %v505_v51, %v519_v47  ;;  %vm542_vm0 = vcmp.gt.f32.partialorder %v519_v47, %v505_v51 }
 0x84b   :  { %v544_v58 = vsel %vm542_vm0, 1, %v685_v0 }
 0x84c   :  { %v523_v53 = vsel %vm522_vm15, %v498_v38, %v521_v49  ;;  %v531_v60 = vmax.f32 %v527_v52, 0.0 }
 0x84d   :  { %v526_v55 = vsel %vm524_vm1, %v525_v33, %v523_v53 }
 0x84e   :  { %v528_v57 = vsub.f32 %v512_v54, %v526_v55  ;;  %vm543_vm3 = vcmp.gt.f32.partialorder %v526_v55, %v512_v54 }
 0x84f   :  { %v545_v56 = vsel %vm543_vm3, 1, %v685_v0 }
 0x850   :  { %v532_v59 = vmax.f32 %v528_v57, 0.0  ;;  %v546_v61 = vadd.s32 %v545_v56, %v544_v58 }
 0x852   :  { %v533_v62 = vadd.f32 %v532_v59, %v531_v60  ;;  %v547_v63 = vrot.slane %v546_v61, 4 }
 0x854   :  { %v534_v1 = vrot.slane %v533_v62, 4  ;;  %v548_v2 = vadd.s32 %v547_v63, %v546_v61 }
 0x856   :  { %v535_v4 = vadd.f32 %v534_v1, %v533_v62  ;;  %v549_v3 = vrot.slane %v548_v2, 2 }
 0x858   :  { %v536_v5 = vrot.slane %v535_v4, 2  ;;  %v550_v6 = vadd.s32 %v549_v3, %v548_v2 }
 0x85a   :  { %v537_v7 = vadd.f32 %v536_v5, %v535_v4  ;;  %v551_v8 = vrot.slane %v550_v6, 1 }
 0x85c   :  { %v538_v9 = vrot.slane %v537_v7, 1  ;;  %v552_v0 = vadd.s32 %v551_v8, %v550_v6 }
 0x85e   :  { %v539_v10 = vadd.f32 %v538_v9, %v537_v7  ;;  %553 = vst.msk [vmem:[#allocation6] sm:$0x1] %vm540_vm4, %v552_v0 }
 0x85f   :  { %647 = shalt.err (!%p644_p9)
}
 0x860   :  { %573 = dma.vmem_to_hbm [thread:$0]  %s571_s4, 16, %s858_s6, [#allocation7]   ;;  %541 = vst.msk [vmem:[#allocation5] sm:$0x1] %vm540_vm4, %v539_v10 }
 0x861   :  { %s656_s19 = scalar_lea.vmem %s561_s14, 16  ;;  %s660_s20 = scalar_lea.vmem %s561_s14, 32 }
 0x862   :  { %p657_p10 = scmp.ne.s32.totalorder %s561_s14, %s656_s19  ;;  %p661_p11 = scmp.lt.s32.totalorder %s561_s14, %s561_s14 }
 0x863   :  { %p662_p12 = scmp.lt.s32.totalorder %s660_s20, %s656_s19 }
 0x865   :  { %p663_p13 = por %p662_p12, %p661_p11 }
 0x867   :  { %p664_p0 = pnand %p663_p13, %p657_p10 }
 0x869   :  { %667 = shalt.err (!%p664_p0)
}
 0x86a   :  { %563 = dma.vmem_to_hbm [thread:$0]  %s561_s14, 16, %s857_s5, [#allocation4]  }
 0x86b   :  { %678 = dma.done.wait [#allocation4], 16  }
 0x86c   :  { %679 = vsyncadd [#allocation4], 4294967280 }
 0x86d   :  { %680 = dma.done.wait [#allocation7], 16  }
 0x86e   :  { %681 = vsyncadd [#allocation7], 4294967280 }
 0x86f   :  { %580 = vsyncpa [#allocation3], 1 }
 0x870   :  { %581 = vsyncpa [#allocation4], 1 }
 0x871   :  { %582 = vsyncpa [#allocation7], 1 }

</bundles_post_ra>
